<compile_context>
chip_gen: v5e
topology: v5e:2x2
jax: 0.10.0
libtpu: 0.0.40
codegen_flags: <defaults>
</compile_context>

<pallas_src>
import functools

import jax
import jax.numpy as jnp
from jax.experimental import pallas as pl
from jax.experimental.pallas import tpu as pltpu

_LANE = 128
_SUBLANE = 8
_K_ACC = 8  # independent per-tile accumulators (ILP for the VALU fold)


def _round_up(a: int, b: int) -> int:
    return ((a + b - 1) // b) * b


def _partial_sum_kernel(x_ref, o_ref, *, tile_rows, total_rows, k_acc,
                        needs_mask, acc_dtype):
    """Reduce a (tile_rows, 128) tile to one lane-dense (8, 128) partial."""

    def fold(x):
        # (tile_rows, 128) -> (m, k*8, 128): reducing the leading (non-tiled)
        # axis gives k_acc independent vadd chains (fills the VALU slots) ...
        m = tile_rows // (_SUBLANE * k_acc)
        s = jnp.sum(x.reshape(m, k_acc * _SUBLANE, _LANE), axis=0)
        # ... then a tiny k->1 tree fold so the stored partial is one vreg.
        return jnp.sum(s.reshape(k_acc, _SUBLANE, _LANE), axis=0)

    x = x_ref[...].astype(acc_dtype)

    if not needs_mask:
        o_ref[...] = fold(x)
    else:
        i = pl.program_id(0)
        last = pl.num_programs(0) - 1

        # Only the last tile can overhang the real row count -> every other
        # step runs the unmasked (pure load + add) path.
        @pl.when(i != last)
        def _():
            o_ref[...] = fold(x)

        @pl.when(i == last)
        def _():
            row_ids = i * tile_rows + jax.lax.broadcasted_iota(
                jnp.int32, (tile_rows, _LANE), 0)
            o_ref[...] = fold(jnp.where(row_ids < total_rows, x,
                                        jnp.zeros_like(x)))


def sum_loss(x: jax.Array, *, tile_rows: int = 4096) -> jax.Array:
    """Equivalent of torch `input.sum()` — returns a 0-d array."""
    if x.dtype == jnp.bool_:
        x = x.astype(jnp.int32)

    if jnp.issubdtype(x.dtype, jnp.floating):
        acc_dtype = jnp.float32
        out_dtype = x.dtype
    else:
        acc_dtype = jnp.int32
        out_dtype = jnp.int32

    flat = x.reshape(-1)               # contiguous reshape: no copy
    n = flat.shape[0]

    # Empty / tiny inputs: not worth a kernel launch (also guards n == 0).
    if n < _LANE:
        return jnp.sum(flat.astype(acc_dtype)).astype(out_dtype)

    # Handle the (<128 element) ragged tail separately instead of
    # materializing a zero-padded copy of the whole input.
    n_main = (n // _LANE) * _LANE
    if n_main < n:
        tail_sum = jnp.sum(flat[n_main:].astype(acc_dtype))
        flat = flat[:n_main]           # see TODO(synk) above re: this copy
    else:
        tail_sum = jnp.zeros((), acc_dtype)

    rows = n_main // _LANE
    x2d = flat.reshape(rows, _LANE)    # free bitcast when n % 128 == 0

    itemsize = jnp.dtype(x.dtype).itemsize
    row_align = _SUBLANE * _K_ACC      # 64 rows

    # --- tile sizing -------------------------------------------------------
    # ~2 MiB per input buffer regardless of dtype (4096 f32 rows, 8192 bf16).
    tr = max(1, tile_rows * 4 // itemsize)
    tr = _round_up(tr, row_align)
    # >= 2 grid steps when the input can be split -> v7x megacore uses both TCs.
    tr = min(tr, _round_up(pl.cdiv(rows, 2), row_align))
    # Keep a single input buffer <= 8 MiB (double-buffered: 16 MiB).
    max_tr = max(row_align,
                 ((8 * 2**20) // (_LANE * itemsize) // row_align) * row_align)
    tr = min(tr, max_tr)
    # Never (much) bigger than the input itself.
    tr = min(tr, _round_up(rows, _SUBLANE))
    # Final alignment for the K-wide accumulator fold.
    k_acc = max(1, min(_K_ACC, tr // _SUBLANE))
    tr = max(_SUBLANE * k_acc, (tr // (_SUBLANE * k_acc)) * (_SUBLANE * k_acc))

    num_blocks = pl.cdiv(rows, tr)
    needs_mask = (rows % tr) != 0

    tile_bytes = tr * _LANE * itemsize
    # Explicit scoped-VMEM budget: covers big tiles on v5e (16 MiB default),
    # never exceeds v7x's 64 MiB physical VMEM.
    vmem_limit = int(min(32 * 2**20, max(16 * 2**20, 2 * tile_bytes + (4 << 20))))

    kernel = functools.partial(
        _partial_sum_kernel,
        tile_rows=tr,
        total_rows=rows,
        k_acc=k_acc,
        needs_mask=needs_mask,
        acc_dtype=acc_dtype,
    )

    partials = pl.pallas_call(
        kernel,
        out_shape=jax.ShapeDtypeStruct((num_blocks * _SUBLANE, _LANE),
                                       acc_dtype),
        grid_spec=pltpu.PrefetchScalarGridSpec(
            num_scalar_prefetch=0,
            grid=(num_blocks,),
            in_specs=[pl.BlockSpec((tr, _LANE), lambda i: (i, 0))],
            # Lane-dense (8, 128) partial per step -> unmasked vector stores.
            out_specs=pl.BlockSpec((_SUBLANE, _LANE), lambda i: (i, 0)),
        ),
        compiler_params=pltpu.CompilerParams(
            # Independent grid steps -> shardable across both TCs on v7x.
            dimension_semantics=("parallel",),
            vmem_limit_bytes=vmem_limit,
        ),
    )(x2d)

    # Tiny final reduce over num_blocks * 8 * 128 partial sums.
    return (jnp.sum(partials) + tail_sum).astype(out_dtype)


if __name__ == "__main__":
    key = jax.random.PRNGKey(0)
    k0, k1, k2, k3 = jax.random.split(key, 4)

    # Main check: shape implied by the module usage (NCHW).
    x = jax.random.normal(k0, (2, 4, 16, 16), dtype=jnp.float32)
    y = jax.block_until_ready(sum_loss(x))
    ref = jnp.sum(x)
    assert jnp.allclose(y, ref, rtol=1e-5, atol=1e-2), (y, ref)

    # Ragged input: exercises the tail-sum + last-step row masking path.
    xr = jax.random.normal(k1, (3, 5, 7, 11), dtype=jnp.float32)
    yr = jax.block_until_ready(sum_loss(xr))
    assert jnp.allclose(yr, jnp.sum(xr), rtol=1e-5, atol=1e-2), (yr, jnp.sum(xr))

    # Multi-block path with an explicit small tile (forces several grid steps).
    xm = jax.random.normal(k2, (2, 4, 32, 128), dtype=jnp.float32)
    ym = jax.block_until_ready(sum_loss(xm, tile_rows=64))
    assert jnp.allclose(ym, jnp.sum(xm), rtol=1e-5, atol=1e-2), (ym, jnp.sum(xm))

    # Default tiles with the >=2-block (megacore) clamp engaged, f32 + bf16.
    xb = jax.random.normal(k3, (4, 8, 64, 128), dtype=jnp.float32)
    yb = jax.block_until_ready(sum_loss(xb))
    assert jnp.allclose(yb, jnp.sum(xb), rtol=1e-4, atol=1e-1), (yb, jnp.sum(xb))

    xbf = xb.astype(jnp.bfloat16)
    ybf = jax.block_until_ready(sum_loss(xbf))
    refbf = jnp.sum(xbf)
    assert jnp.allclose(ybf.astype(jnp.float32), refbf.astype(jnp.float32),
                        rtol=2e-2, atol=2.0), (ybf, refbf)

    print("KERNEL_OK")
</pallas_src>

<mosaic_0001>
module attributes {stable_mosaic.version = 11 : i64} {
  func.func @_partial_sum_kernel(%arg0: i32, %arg1: memref<16x128xf32, #tpu.memory_space<vmem>>, %arg2: memref<8x128xf32, #tpu.memory_space<vmem>>) attributes {dimension_semantics = [#tpu.dimension_semantics<parallel>], iteration_bounds = array<i64: 1>, scalar_prefetch = 0 : i64, scratch_operands = 0 : i64, tpu.core_type = #tpu.core_type<tc>, window_params = [{transform_indices = @transform_0, window_bounds = array<i64: 16, 128>}, {transform_indices = @transform_1, window_bounds = array<i64: 8, 128>}]} {
    %c0 = arith.constant 0 : index
    %c0_0 = arith.constant 0 : index
    %0 = vector.load %arg1[%c0, %c0_0] : memref<16x128xf32, #tpu.memory_space<vmem>>, vector<16x128xf32>
    %1 = vector.shape_cast %0 : vector<16x128xf32> to vector<1x16x128xf32>
    %cst = arith.constant dense<0.000000e+00> : vector<16x128xf32>
    %2 = vector.multi_reduction <add>, %1, %cst [0] : vector<1x16x128xf32> to vector<16x128xf32>
    %3 = vector.shape_cast %2 : vector<16x128xf32> to vector<2x8x128xf32>
    %cst_1 = arith.constant dense<0.000000e+00> : vector<8x128xf32>
    %4 = vector.multi_reduction <add>, %3, %cst_1 [0] : vector<2x8x128xf32> to vector<8x128xf32>
    %c0_2 = arith.constant 0 : index
    %c0_3 = arith.constant 0 : index
    %5 = vector.load %arg2[%c0_2, %c0_3] : memref<8x128xf32, #tpu.memory_space<vmem>>, vector<8x128xf32>
    tpu.vector_store %arg2[%c0_2, %c0_3], %4 {strides = array<i32>} : memref<8x128xf32, #tpu.memory_space<vmem>>, vector<8x128xf32>,
    return
  }
  func.func @transform_0(%arg0: i32) -> (i32, i32) {
    %c0_i32 = arith.constant 0 : i32
    %c0_i32_0 = arith.constant 0 : i32
    return %arg0, %c0_i32 : i32, i32
  }
  func.func @transform_1(%arg0: i32) -> (i32, i32) {
    %c0_i32 = arith.constant 0 : i32
    %c0_i32_0 = arith.constant 0 : i32
    return %arg0, %c0_i32 : i32, i32
  }
}

</mosaic_0001>

<bundles_post_ra>
// kernel: tpu_custom_call.1
= control target key start
LH: loop header
LB: loop body
LE: loop exit
PB: predicated region body
PF: predicated region fallthrough
CT: control target
= control target key end

     0   :  { %6 = vsyncpa [#allocation3], 0  ;;  %s124_s0 = inlined_call_operand.hbm [shape: f32[16,128], index: 0, kind: input, shape index: {}]   ;;  %s125_s1 = inlined_call_operand.hbm [shape: f32[8,128], index: 1, kind: output, shape index: {}]  }
   0x1   :  { %7 = vsyncpa [#allocation4], 0  ;;  %s12_s8 = sshll.u32 %s124_s0, 4  ;;  %s104_s9 = smov [#allocation2]   ;;  %s13_s8 = int_to_ptr.hbm [resolvable:$true] %s12_s8 }
   0x2   :  { %s14_s10 = sshll.u32 %s104_s9, 4  ;;  %s105_s11 = smov 128   ;;  %s15_s10 = int_to_ptr.vmem [resolvable:$true] %s14_s10 }
   0x3   :  { %s106_s12 = smov 8  }
   0x4   :  { %20 = dma.hbm_to_vmem [thread:$0]  %s13_s8, 256, %s15_s10, [#allocation3], %s105_s11, %s105_s11, %s106_s12  }
   0x5   :  { %100 = dma.done.wait [#allocation3], 256  }
   0x6   :  { %101 = vsyncadd [#allocation3], 4294967040  ;;  %s107_s13 = smov [#allocation5]   ;;  %s38_s17 = sshll.u32 %s125_s1, 4  ;;  %v25_v0 = vld [vmem:[#allocation2] sm:$0xff]  ;;  %v26_v1 = vld [vmem:[#allocation2 + $0x8] sm:$0xff]  ;;  %s39_s17 = int_to_ptr.hbm [resolvable:$true] %s38_s17 }
   0x7   :  { %s36_s14 = sshll.u32 %s107_s13, 4  ;;  %v29_v2 = vadd.f32 %v26_v1, %v25_v0  ;;  %s37_s14 = int_to_ptr.vmem [resolvable:$true] %s36_s14 }
   0x9   :  { %30 = vst [vmem:[#allocation5] sm:$0xff] %v29_v2 }
   0xa   :  { %41 = dma.vmem_to_hbm [thread:$0]  %s37_s14, 128, %s39_s17, [#allocation4]  }
   0xb   :  { %102 = dma.done.wait [#allocation4], 128  }
   0xc   :  { %103 = vsyncadd [#allocation4], 4294967168 }
   0xd   :  { %46 = vsyncpa [#allocation3], 1 }
   0xe   :  { %47 = vsyncpa [#allocation4], 1 }

</bundles_post_ra>
